<compile_context>
chip_gen: v7x
topology: tpu7x:2x2x1
jax: 0.10.0
libtpu: 0.0.40
codegen_flags: <defaults>
</compile_context>

<pallas_src>
import functools

import jax
import jax.numpy as jnp
from jax.experimental import pallas as pl
from jax.experimental.pallas import tpu as pltpu


def _round_up(x, m):
    return ((x + m - 1) // m) * m


def _simhash_kernel(x_ref, proj_ref, packt_ref, out_ref):
    # x_ref    : (TM, D)    f32 rows
    # proj_ref : (D, T*H)   +/-1 entries (f32)
    # packt_ref: (T, T*H)   f32, transposed block-diagonal powers of two
    # out_ref  : (T, TM)    int32 (transposed -> lane-dense, unmasked stores)
    xv = x_ref[...].astype(proj_ref.dtype)
    y = jnp.dot(xv, proj_ref[...], preferred_element_type=jnp.float32)   # (TM, T*H)
    bits = (y < 0).astype(jnp.float32)                                   # x>=0 -> 0, x<0 -> 1
    # Pack bits into per-table integer codes with a second small MXU matmul,
    # keeping TM on the lane axis of the result (>=128 wide output stores).
    codes_t = jnp.dot(packt_ref[...], bits.T,
                      preferred_element_type=jnp.float32)                # (T, TM)
    # Codes are exact small integers (< 2**H, H <= 24) -> safe cast.
    out_ref[...] = codes_t.astype(out_ref.dtype)


def make_projection(key, input_dim, num_tables, num_hashes):
    # torch.sign(torch.normal(0, 0.02, (D, H*T))) -> +/-1 matrix, kept in f32
    # to match the PyTorch parameter dtype exactly.
    g = jax.random.normal(key, (input_dim, num_hashes * num_tables), jnp.float32) * 0.02
    return jnp.sign(g)


def make_packt(num_tables, num_hashes):
    # packt[t, t*H + j] = 2 ** (H - 1 - j), zero elsewhere (transposed block diagonal)
    powers = 2.0 ** jnp.arange(num_hashes - 1, -1, -1, dtype=jnp.float32)  # (H,)
    eye_t = jnp.eye(num_tables, dtype=jnp.float32)                          # (T, T)
    packt = eye_t[:, :, None] * powers[None, None, :]                       # (T, T, H)
    return packt.reshape(num_tables, num_tables * num_hashes)               # (T, T*H)


@functools.partial(jax.jit, static_argnames=("num_tables", "num_hashes", "tm"))
def simhash_forward(x, projection, packt, *, num_tables, num_hashes, tm=512):
    # x: (..., D) -> codes: (..., T) int32
    # NOTE: PyTorch returns int64 (.long()); JAX defaults to int32 (x64 disabled).
    lead_shape = x.shape[:-1]
    d = x.shape[-1]
    th = num_tables * num_hashes
    assert projection.shape == (d, th), projection.shape
    assert packt.shape == (num_tables, th), packt.shape
    # f32 accumulation of the pack matmul is exact only while 2**H - 1 < 2**24.
    assert num_hashes <= 24, "num_hashes > 24 would lose exactness in f32 packing"

    xf = x.reshape(-1, d).astype(jnp.float32)
    n = xf.shape[0]

    # Row tile: multiple of 128 (MXU-aligned on all generations); don't blow up
    # tiny inputs. Pad rows to a tile multiple instead of asserting divisibility.
    tm = _round_up(max(tm, 128), 128)
    tm_eff = min(tm, _round_up(n, 128))
    n_pad = _round_up(n, tm_eff)
    if n_pad != n:
        xf = jnp.pad(xf, ((0, n_pad - n), (0, 0)))
    grid = (n_pad // tm_eff,)

    # VMEM budget: double-buffered x tile + (conservatively double-buffered)
    # resident projection/pack + double-buffered output tile + intermediates,
    # plus headroom; clamped to v7x's 64 MiB physical VMEM.
    x_bytes = 2 * tm_eff * d * 4
    w_bytes = 2 * (d * th * projection.dtype.itemsize + num_tables * th * 4)
    o_bytes = 2 * num_tables * tm_eff * 4
    tmp_bytes = 3 * tm_eff * th * 4
    vmem_limit = int(min(max(32 * 2**20,
                             x_bytes + w_bytes + o_bytes + tmp_bytes + (2 << 20)),
                         64 * 2**20))

    out = pl.pallas_call(
        _simhash_kernel,
        out_shape=jax.ShapeDtypeStruct((num_tables, n_pad), jnp.int32),
        grid_spec=pltpu.PrefetchScalarGridSpec(
            num_scalar_prefetch=0,
            grid=grid,
            in_specs=[
                pl.BlockSpec((tm_eff, d), lambda i: (i, 0)),          # x row tile
                pl.BlockSpec((d, th), lambda i: (0, 0)),              # projection (resident)
                pl.BlockSpec((num_tables, th), lambda i: (0, 0)),     # pack^T (resident)
            ],
            out_specs=pl.BlockSpec((num_tables, tm_eff), lambda i: (0, i)),
        ),
        compiler_params=pltpu.CompilerParams(
            dimension_semantics=("parallel",),
            vmem_limit_bytes=vmem_limit,
        ),
    )(xf, projection, packt)

    codes = out[:, :n].T  # drop row padding, back to (N, T)
    return codes.reshape(*lead_shape, num_tables)


def simhash_reference(x, projection, num_tables, num_hashes):
    # Same f32 path as the kernel (and the PyTorch module).
    y = jnp.dot(x.astype(jnp.float32), projection.astype(jnp.float32),
                preferred_element_type=jnp.float32)
    y = y.reshape(*y.shape[:-1], num_tables, num_hashes)
    bits = (y < 0).astype(jnp.int32)
    mask = (2 ** jnp.arange(num_hashes - 1, -1, -1)).astype(jnp.int32)
    return jnp.sum(mask * bits, axis=-1)


if __name__ == "__main__":
    key = jax.random.PRNGKey(0)
    k_x, k_p = jax.random.split(key)

    batch, seq, input_dim = 2, 8, 32
    num_tables, num_hashes = 4, 8

    x = jax.random.normal(k_x, (batch, seq, input_dim), jnp.float32)
    projection = make_projection(k_p, input_dim, num_tables, num_hashes)
    packt = make_packt(num_tables, num_hashes)

    codes = simhash_forward(
        x, projection, packt, num_tables=num_tables, num_hashes=num_hashes, tm=512)
    codes = jax.block_until_ready(codes)

    ref = simhash_reference(x, projection, num_tables, num_hashes)
    assert codes.shape == (batch, seq, num_tables), codes.shape
    assert jnp.array_equal(codes, ref), "mismatch vs reference"

    print("KERNEL_OK")
</pallas_src>

<mosaic_0001>
module attributes {stable_mosaic.version = 11 : i64} {
  func.func @_simhash_kernel(%arg0: i32, %arg1: memref<128x32xf32, #tpu.memory_space<vmem>>, %arg2: memref<32x32xf32, #tpu.memory_space<vmem>>, %arg3: memref<4x32xf32, #tpu.memory_space<vmem>>, %arg4: memref<4x128xi32, #tpu.memory_space<vmem>>) attributes {dimension_semantics = [#tpu.dimension_semantics<parallel>], iteration_bounds = array<i64: 1>, scalar_prefetch = 0 : i64, scratch_operands = 0 : i64, tpu.core_type = #tpu.core_type<tc>, window_params = [{transform_indices = @transform_0, window_bounds = array<i64: 128, 32>}, {pipeline_mode = #tpu.pipeline_mode<synchronous>, transform_indices = @transform_1, window_bounds = array<i64: 32, 32>}, {pipeline_mode = #tpu.pipeline_mode<synchronous>, transform_indices = @transform_2, window_bounds = array<i64: 4, 32>}, {transform_indices = @transform_3, window_bounds = array<i64: 4, 128>}]} {
    %c0 = arith.constant 0 : index
    %c0_0 = arith.constant 0 : index
    %0 = vector.load %arg1[%c0, %c0_0] : memref<128x32xf32, #tpu.memory_space<vmem>>, vector<128x32xf32>
    %c0_1 = arith.constant 0 : index
    %c0_2 = arith.constant 0 : index
    %1 = vector.load %arg2[%c0_1, %c0_2] : memref<32x32xf32, #tpu.memory_space<vmem>>, vector<32x32xf32>
    %cst = arith.constant dense<0.000000e+00> : vector<128x32xf32>
    %2 = tpu.matmul %0, %1, %cst {dimension_numbers = #tpu.dot_dimension_numbers<[1], [0], [0], [1], [0, 0, 1, 1], [], []>} : vector<128x32xf32>, vector<32x32xf32>, vector<128x32xf32> -> vector<128x32xf32>
    %cst_3 = arith.constant 0.000000e+00 : f32
    %3 = vector.broadcast %cst_3 : f32 to vector<128x32xf32>
    %4 = arith.cmpf olt, %2, %3 : vector<128x32xf32>
    %5 = arith.extui %4 : vector<128x32xi1> to vector<128x32xi32>
    %6 = arith.sitofp %5 : vector<128x32xi32> to vector<128x32xf32>
    %c0_4 = arith.constant 0 : index
    %c0_5 = arith.constant 0 : index
    %7 = vector.load %arg3[%c0_4, %c0_5] : memref<4x32xf32, #tpu.memory_space<vmem>>, vector<4x32xf32>
    %8 = tpu.transpose %6, [1, 0] : vector<128x32xf32> -> vector<32x128xf32>
    %cst_6 = arith.constant dense<0.000000e+00> : vector<4x128xf32>
    %9 = tpu.matmul %7, %8, %cst_6 {dimension_numbers = #tpu.dot_dimension_numbers<[1], [0], [0], [1], [0, 0, 1, 1], [], []>} : vector<4x32xf32>, vector<32x128xf32>, vector<4x128xf32> -> vector<4x128xf32>
    %10 = arith.fptosi %9 : vector<4x128xf32> to vector<4x128xi32>
    %c0_7 = arith.constant 0 : index
    %c0_8 = arith.constant 0 : index
    %11 = vector.load %arg4[%c0_7, %c0_8] : memref<4x128xi32, #tpu.memory_space<vmem>>, vector<4x128xi32>
    tpu.vector_store %arg4[%c0_7, %c0_8], %10 {strides = array<i32>} : memref<4x128xi32, #tpu.memory_space<vmem>>, vector<4x128xi32>,
    return
  }
  func.func @transform_0(%arg0: i32) -> (i32, i32) {
    %c0_i32 = arith.constant 0 : i32
    %c0_i32_0 = arith.constant 0 : i32
    return %arg0, %c0_i32 : i32, i32
  }
  func.func @transform_1(%arg0: i32) -> (i32, i32) {
    %c0_i32 = arith.constant 0 : i32
    %c0_i32_0 = arith.constant 0 : i32
    %c0_i32_1 = arith.constant 0 : i32
    return %c0_i32, %c0_i32_0 : i32, i32
  }
  func.func @transform_2(%arg0: i32) -> (i32, i32) {
    %c0_i32 = arith.constant 0 : i32
    %c0_i32_0 = arith.constant 0 : i32
    %c0_i32_1 = arith.constant 0 : i32
    return %c0_i32, %c0_i32_0 : i32, i32
  }
  func.func @transform_3(%arg0: i32) -> (i32, i32) {
    %c0_i32 = arith.constant 0 : i32
    %c0_i32_0 = arith.constant 0 : i32
    return %c0_i32, %arg0 : i32, i32
  }
}

</mosaic_0001>

<bundles_post_ra>
// kernel: simhash_forward.1
= control target key start
LH: loop header
LB: loop body
LE: loop exit
PB: predicated region body
PF: predicated region fallthrough
CT: control target
= control target key end

     0   :  { %vm34_vm0 = vcmask 261120   ;;  %v602_v22 = vmov 0.0|0.0   ;;  %vm603_vm1 = vmmov 0   ;;  %v604_v23 = vmov 0.0   ;;  %s755_s1 = inlined_call_operand.vmem [shape: f32[32,32], index: 1, kind: input, shape index: {}]   ;;  %s756_s0 = inlined_call_operand.vmem [shape: f32[128,32], index: 0, kind: input, shape index: {}]   ;;  %s757_s2 = inlined_call_operand.vmem [shape: f32[4,32], index: 2, kind: input, shape index: {}]   ;;  %s758_s3 = inlined_call_operand.vmem [shape: s32[4,128], index: 3, kind: output, shape index: {}]  }
   0x1   :  { %v30_v0 = vld [vmem:[%s755_s1] sm:$0xff]  ;;  %v31_v1 = vld [vmem:[%s755_s1 + $0x8] sm:$0xff]  ;;  %v32_v2 = vld [vmem:[%s755_s1 + $0x10] sm:$0xff]  ;;  %565 = vmatprep.subr.bf16.mxu1 %v602_v22  ;;  %554 = vmatprep.mubr.msk.f32.mxu1 %vm603_vm1, %v604_v23 }
   0x2   :  { %v557_v3 = vpack.c.bf16 %v31_v1, %v30_v0  ;;  %v33_v4 = vld [vmem:[%s755_s1 + $0x18] sm:$0xff]  ;;  %v14_v5 = vld [vmem:[%s756_s0] sm:$0xff]  ;;  %v15_v7 = vld [vmem:[%s756_s0 + $0x8] sm:$0xff] }
   0x3   :  { %v561_v6 = vpack.c.bf16 %v33_v4, %v32_v2  ;;  %498 = vmatprep.mubr.msk.f32.mxu0 %vm34_vm0, %v14_v5  ;;  %v16_v8 = vld [vmem:[%s756_s0 + $0x10] sm:$0xff]  ;;  %v17_v9 = vld [vmem:[%s756_s0 + $0x18] sm:$0xff]  ;;  %v18_v10 = vld [vmem:[%s756_s0 + $0x20] sm:$0xff] }
   0x4   :  { %558 = vmatprep.subr.bf16.mxu0 %v557_v3  ;;  %v19_v11 = vld [vmem:[%s756_s0 + $0x28] sm:$0xff]  ;;  %v20_v12 = vld [vmem:[%s756_s0 + $0x30] sm:$0xff]  ;;  %v21_v13 = vld [vmem:[%s756_s0 + $0x38] sm:$0xff] }
   0x5   :  { %560 = vmatpush3.bf16.msra.mxu0 %v557_v3  ;;  %v22_v14 = vld [vmem:[%s756_s0 + $0x40] sm:$0xff]  ;;  %v23_v15 = vld [vmem:[%s756_s0 + $0x48] sm:$0xff]  ;;  %v24_v16 = vld [vmem:[%s756_s0 + $0x50] sm:$0xff] }
   0x6   :  { %562 = vmatprep.subr.bf16.mxu0 %v561_v6  ;;  %v25_v17 = vld [vmem:[%s756_s0 + $0x58] sm:$0xff]  ;;  %v26_v18 = vld [vmem:[%s756_s0 + $0x60] sm:$0xff]  ;;  %v27_v19 = vld [vmem:[%s756_s0 + $0x68] sm:$0xff] }
   0x7   :  { %v28_v20 = vld [vmem:[%s756_s0 + $0x70] sm:$0xff]  ;;  %v29_v21 = vld [vmem:[%s756_s0 + $0x78] sm:$0xff]  ;;  %vm707_vm4 = vmpackc.low %vm34_vm0, %vm34_vm0 }
   0x8   :  { %v276_v1 = vld [vmem:[%s757_s2] sm:$0xf] }
   0x9   :  { %564 = vmatpush3.bf16.msra.mxu0 %v561_v6 }
   0xc   :  { %499 = vmatmul.mubr.msk.f32.vlgmr.msra.gmra.mrb[0].mxu0 %vm34_vm0, %v15_v7 }
   0xd   :  { %501 = vmatprep.mubr.msk.f32.mxu0 %vm34_vm0, %v16_v8 }
  0x10   :  { %502 = vmatmul.mubr.msk.f32.gmra.mrb[2].mxu0 %vm34_vm0, %v17_v9 }
  0x11   :  { %504 = vmatprep.mubr.msk.f32.mxu0 %vm34_vm0, %v18_v10 }
  0x14   :  { %505 = vmatmul.mubr.msk.f32.gmra.mrb[4].mxu0 %vm34_vm0, %v19_v11 }
  0x15   :  { %507 = vmatprep.mubr.msk.f32.mxu0 %vm34_vm0, %v20_v12 }
  0x18   :  { %508 = vmatmul.mubr.msk.f32.gmra.mrb[6].mxu0 %vm34_vm0, %v21_v13 }
  0x19   :  { %510 = vmatprep.mubr.msk.f32.mxu0 %vm34_vm0, %v22_v14 }
  0x1c   :  { %511 = vmatmul.mubr.msk.f32.gmra.mrb[8].mxu0 %vm34_vm0, %v23_v15 }
  0x1d   :  { %513 = vmatprep.mubr.msk.f32.mxu0 %vm34_vm0, %v24_v16 }
  0x20   :  { %514 = vmatmul.mubr.msk.f32.gmra.mrb[10].mxu0 %vm34_vm0, %v25_v17 }
  0x21   :  { %516 = vmatprep.mubr.msk.f32.mxu0 %vm34_vm0, %v26_v18 }
  0x24   :  { %517 = vmatmul.mubr.msk.f32.gmra.mrb[12].mxu0 %vm34_vm0, %v27_v19 }
  0x25   :  { %519 = vmatprep.mubr.msk.f32.mxu0 %vm34_vm0, %v28_v20 }
  0x28   :  { %520 = vmatmul.mubr.msk.f32.gmra.mrb[14].mxu0 %vm34_vm0, %v29_v21 }
  0xdf   :  { %v500_v24 = vpop.f32.mrb[0].mxu0 }
  0xe0   :  { %vm229_vm2 = vcmp.lt.f32.partialorder %v500_v24, 0.0  ;;  %v149_v25 = vpop.f32.mrb[1].mxu0 }
  0xe1   :  { %v421_v26 = vsel %vm229_vm2, 1.0, %v604_v23  ;;  %vm228_vm3 = vcmp.lt.f32.partialorder %v149_v25, 0.0 }
  0xe2   :  { %v420_v27 = vsel %vm228_vm3, 1.0, %v604_v23 }
  0xe3   :  { %v566_v29 = vpack.c.bf16 %v421_v26, %v420_v27  ;;  %v503_v30 = vpop.f32.mrb[2].mxu0 }
  0xe4   :  { %vm231_vm5 = vcmp.lt.f32.partialorder %v503_v30, 0.0  ;;  %v159_v31 = vpop.f32.mrb[3].mxu0 }
  0xe5   :  { %568 = vmatpush3.bf16.xpose.msk.msra.mxu1 %vm707_vm4, %v566_v29  ;;  %v423_v32 = vsel %vm231_vm5, 1.0, %v604_v23  ;;  %vm230_vm6 = vcmp.lt.f32.partialorder %v159_v31, 0.0 }
  0xe6   :  { %v422_v33 = vsel %vm230_vm6, 1.0, %v604_v23  ;;  %569 = vmatprep.subr.bf16.mxu1 %v602_v22 }
  0xe7   :  { %v570_v34 = vpack.c.bf16 %v423_v32, %v422_v33  ;;  %v506_v35 = vpop.f32.mrb[4].mxu0 }
  0xe8   :  { %vm233_vm7 = vcmp.lt.f32.partialorder %v506_v35, 0.0  ;;  %v169_v36 = vpop.f32.mrb[5].mxu0 }
  0xe9   :  { %v425_v37 = vsel %vm233_vm7, 1.0, %v604_v23  ;;  %vm232_vm8 = vcmp.lt.f32.partialorder %v169_v36, 0.0 }
  0xea   :  { %v424_v38 = vsel %vm232_vm8, 1.0, %v604_v23 }
  0xeb   :  { %v574_v39 = vpack.c.bf16 %v425_v37, %v424_v38  ;;  %v509_v40 = vpop.f32.mrb[6].mxu0 }
  0xec   :  { %vm235_vm9 = vcmp.lt.f32.partialorder %v509_v40, 0.0  ;;  %v179_v41 = vpop.f32.mrb[7].mxu0 }
  0xed   :  { %572 = vmatpush3.bf16.xpose.msk.msra.mxu1 %vm707_vm4, %v570_v34  ;;  %v427_v42 = vsel %vm235_vm9, 1.0, %v604_v23  ;;  %vm234_vm10 = vcmp.lt.f32.partialorder %v179_v41, 0.0 }
  0xee   :  { %573 = vmatprep.subr.bf16.mxu1 %v602_v22  ;;  %v426_v43 = vsel %vm234_vm10, 1.0, %v604_v23 }
  0xef   :  { %v578_v44 = vpack.c.bf16 %v427_v42, %v426_v43  ;;  %v512_v45 = vpop.f32.mrb[8].mxu0 }
  0xf0   :  { %vm237_vm11 = vcmp.lt.f32.partialorder %v512_v45, 0.0  ;;  %v189_v46 = vpop.f32.mrb[9].mxu0 }
  0xf1   :  { %v429_v47 = vsel %vm237_vm11, 1.0, %v604_v23  ;;  %vm236_vm12 = vcmp.lt.f32.partialorder %v189_v46, 0.0 }
  0xf2   :  { %v428_v48 = vsel %vm236_vm12, 1.0, %v604_v23 }
  0xf3   :  { %v582_v49 = vpack.c.bf16 %v429_v47, %v428_v48  ;;  %v515_v50 = vpop.f32.mrb[10].mxu0 }
  0xf4   :  { %vm239_vm13 = vcmp.lt.f32.partialorder %v515_v50, 0.0  ;;  %v199_v51 = vpop.f32.mrb[11].mxu0 }
  0xf5   :  { %576 = vmatpush3.bf16.xpose.msk.msra.mxu1 %vm707_vm4, %v574_v39  ;;  %v431_v52 = vsel %vm239_vm13, 1.0, %v604_v23  ;;  %vm238_vm14 = vcmp.lt.f32.partialorder %v199_v51, 0.0 }
  0xf6   :  { %577 = vmatprep.subr.bf16.mxu1 %v602_v22  ;;  %v430_v53 = vsel %vm238_vm14, 1.0, %v604_v23 }
  0xf7   :  { %v586_v54 = vpack.c.bf16 %v431_v52, %v430_v53  ;;  %v518_v55 = vpop.f32.mrb[12].mxu0 }
  0xf8   :  { %vm241_vm15 = vcmp.lt.f32.partialorder %v518_v55, 0.0  ;;  %v209_v56 = vpop.f32.mrb[13].mxu0 }
  0xf9   :  { %v433_v57 = vsel %vm241_vm15, 1.0, %v604_v23  ;;  %vm240_vm1 = vcmp.lt.f32.partialorder %v209_v56, 0.0 }
  0xfa   :  { %v432_v58 = vsel %vm240_vm1, 1.0, %v604_v23 }
  0xfb   :  { %v590_v59 = vpack.c.bf16 %v433_v57, %v432_v58  ;;  %v521_v60 = vpop.f32.mrb[14].mxu0 }
  0xfc   :  { %vm243_vm2 = vcmp.lt.f32.partialorder %v521_v60, 0.0  ;;  %v219_v61 = vpop.f32.mrb[15].mxu0 }
  0xfd   :  { %580 = vmatpush3.bf16.xpose.msk.msra.mxu1 %vm707_vm4, %v578_v44  ;;  %v435_v62 = vsel %vm243_vm2, 1.0, %v604_v23  ;;  %vm242_vm3 = vcmp.lt.f32.partialorder %v219_v61, 0.0 }
  0xfe   :  { %581 = vmatprep.subr.bf16.mxu1 %v602_v22  ;;  %v434_v63 = vsel %vm242_vm3, 1.0, %v604_v23 }
  0xff   :  { %v594_v0 = vpack.c.bf16 %v435_v62, %v434_v63 }
 0x105   :  { %584 = vmatpush3.bf16.xpose.msk.msra.mxu1 %vm707_vm4, %v582_v49 }
 0x106   :  { %585 = vmatprep.subr.bf16.mxu1 %v602_v22 }
 0x10d   :  { %588 = vmatpush3.bf16.xpose.msk.msra.mxu1 %vm707_vm4, %v586_v54 }
 0x10e   :  { %589 = vmatprep.subr.bf16.mxu1 %v602_v22 }
 0x115   :  { %592 = vmatpush3.bf16.xpose.msk.msra.mxu1 %vm707_vm4, %v590_v59 }
 0x116   :  { %593 = vmatprep.subr.bf16.mxu1 %v602_v22 }
 0x11d   :  { %596 = vmatpush3.bf16.xpose.msk.msra.mxu1 %vm707_vm4, %v594_v0 }
 0x124   :  { %555 = vmatmul.mubr.msk.f32.vlgmr.msra.gmra.mrb[0].mxu1 %vm34_vm0, %v276_v1 }
 0x1f7   :  { %v394_v2 = vpop.f32.mrb[0].mxu1 }
 0x1f8   :  { %v597_v3 = vtrunc.f32 %v394_v2  ;;  %v556_v4 = vpop.f32.mrb[1].mxu1 }
 0x1fa   :  { %v598_v5 = vcvt.f32.s32 %v597_v3 }
 0x1fc   :  { %399 = vst [vmem:[%s758_s3] sm:$0xf] %v598_v5 }

</bundles_post_ra>
